<compile_context>
chip_gen: v6e
topology: v6e:2x2x1
jax: 0.10.0
libtpu: 0.0.40
codegen_flags: <defaults>
</compile_context>

<pallas_src>
import functools

import jax
import jax.numpy as jnp
from jax.experimental import pallas as pl
from jax.experimental.pallas import tpu as pltpu

_EPS = 1e-5


def _round_up(n, m):
    return ((n + m - 1) // m) * m


def _graphsage_kernel(num_layers, num_graphs, hidden_real,
                      x_ref, adj_ref, invdeg_ref, pmean_ref, invcnt_ref,
                      pmask_t_ref, nmask_ref, wstack_ref, vstack_ref,
                      wout_ref, bout_ref, o_ref, maxpool_ref):
    """Whole GraphSAGE forward in one invocation (all operands resident in VMEM)."""
    hp = x_ref.shape[1]
    adj = adj_ref[...]                         # (N, N)  bf16, small-integer edge counts
    inv_deg = invdeg_ref[...]                  # (N, 1)  f32, 1/in-degree (0 if isolated)
    nmask = nmask_ref[...]                     # (N, 1)  f32, 1.0 for real nodes
    n_real = jnp.sum(nmask, axis=0, keepdims=True)            # (1, 1)
    inv_n = 1.0 / jnp.maximum(n_real, 1.0)
    inv_h = jnp.float32(1.0 / hidden_real)
    # Lane mask selecting the real hidden features (padded lanes are zero everywhere,
    # but the two-pass LN variance needs them excluded explicitly).
    hmask = (jax.lax.broadcasted_iota(jnp.int32, (1, hp), 1) < hidden_real
             ).astype(jnp.float32)

    def layer_body(l, out):
        # Weights: dynamic index on the leading (layer) axis of the packed bf16 stack.
        wl = wstack_ref[4 * l + 0]             # (Hp, Hp) bf16
        wr = wstack_ref[4 * l + 1]
        mw1 = wstack_ref[4 * l + 2]
        mw2 = wstack_ref[4 * l + 3]
        # Per-layer vectors sliced directly off the ref (no (8,Hp) intermediate).
        bl = vstack_ref[l, 0:1, :]             # (1, Hp) f32
        mb1 = vstack_ref[l, 1:2, :]
        bng = vstack_ref[l, 2:3, :]
        bnb = vstack_ref[l, 3:4, :]
        mb2 = vstack_ref[l, 4:5, :]
        lng = vstack_ref[l, 5:6, :]
        lnb = vstack_ref[l, 6:7, :]

        # ---- SAGEConv: exact mean aggregation (bf16 MXU dot, f32 1/deg scaling) ----
        out_bf = out.astype(jnp.bfloat16)
        agg = jnp.dot(adj, out_bf, preferred_element_type=jnp.float32) * inv_deg   # (N, Hp)
        h = (jnp.dot(agg.astype(jnp.bfloat16), wl, preferred_element_type=jnp.float32)
             + jnp.dot(out_bf, wr, preferred_element_type=jnp.float32)
             + bl)

        # ---- MLP: Linear -> BatchNorm1d (two-pass batch stats over real nodes) -> ReLU -> Linear ----
        h1 = jnp.dot(h.astype(jnp.bfloat16), mw1, preferred_element_type=jnp.float32) + mb1
        mu = jnp.sum(h1 * nmask, axis=0, keepdims=True) * inv_n                    # (1, Hp)
        d = (h1 - mu) * nmask
        var = jnp.sum(d * d, axis=0, keepdims=True) * inv_n
        h1 = (h1 - mu) * jax.lax.rsqrt(var + _EPS) * bng + bnb
        h1 = jnp.maximum(h1, 0.0)
        h2 = jnp.dot(h1.astype(jnp.bfloat16), mw2, preferred_element_type=jnp.float32) + mb2

        # ---- LayerNorm over the real hidden features (two-pass, lane-masked) ----
        # Padded feature lanes of h2 are exactly 0 (zero-padded weights/biases).
        mu2 = jnp.sum(h2, axis=1, keepdims=True) * inv_h                            # (N, 1)
        d2 = (h2 - mu2) * hmask
        var2 = jnp.sum(d2 * d2, axis=1, keepdims=True) * inv_h
        hn = (h2 - mu2) * jax.lax.rsqrt(var2 + _EPS) * lng + lnb

        # ---- LeakyReLU(0.1) ----
        return jnp.where(hn >= 0.0, hn, 0.1 * hn)                                   # (N, Hp)

    out = jax.lax.fori_loop(0, num_layers, layer_body, x_ref[...])

    # ---- Per-graph pooling ----
    out_bf = out.astype(jnp.bfloat16)
    # mean pool: binary one-hot dot on the MXU, exact 1/count scaling in f32.
    mean_pool = (jnp.dot(pmean_ref[...], out_bf, preferred_element_type=jnp.float32)
                 * invcnt_ref[...])                                                 # (G, Hp)

    # max pool: per-graph masked (N,Hp)->(1,Hp) reductions written into VMEM scratch.
    mask_t = pmask_t_ref[...]                                                       # (N, G) f32
    big_neg = jnp.float32(-1e30)
    for g in range(num_graphs):
        mcol = mask_t[:, g:g + 1]                                                   # (N, 1)
        masked = jnp.where(mcol > 0.0, out, big_neg)                                # (N, Hp)
        rowmax = jnp.max(masked, axis=0, keepdims=True)                             # (1, Hp)
        # empty-graph guard: inv_cnt is 0 for empty graphs
        maxpool_ref[g:g + 1, :] = jnp.where(invcnt_ref[g:g + 1, :] > 0.0, rowmax, 0.0)
    max_pool = maxpool_ref[...]                                                     # (G, Hp)

    # ---- Readout: split cat([max, mean]) @ W into two dots (no lane-axis concat) ----
    o_ref[...] = (jnp.dot(max_pool.astype(jnp.bfloat16), wout_ref[0],
                          preferred_element_type=jnp.float32)
                  + jnp.dot(mean_pool.astype(jnp.bfloat16), wout_ref[1],
                            preferred_element_type=jnp.float32)
                  + bout_ref[...])                                                  # (G, Ep)


def graphsage_forward(x, adj, inv_deg, pool_onehot, inv_cnt, pool_mask_t, nmask,
                      wstack, vstack, wout, bout,
                      *, num_layers, hidden_real, embed_real):
    num_graphs = pool_onehot.shape[0]
    n_pad, hp = x.shape
    ep = bout.shape[1]
    inputs = [x, adj, inv_deg, pool_onehot, inv_cnt, pool_mask_t, nmask,
              wstack, vstack, wout, bout]
    kernel = functools.partial(_graphsage_kernel, num_layers, num_graphs, hidden_real)

    flops = num_layers * (2 * n_pad * n_pad * hp + 4 * 2 * n_pad * hp * hp)
    flops += 2 * num_graphs * n_pad * hp + 2 * (2 * num_graphs * hp * ep)
    transcendentals = num_layers * (hp + n_pad)            # rsqrt per BN / LN
    bytes_accessed = sum(int(a.size) * a.dtype.itemsize for a in inputs) + num_graphs * ep * 4

    # Everything is VMEM-resident; the real footprint is <1 MiB at these sizes, so keep
    # the scoped-VMEM cap small (leaves compiler headroom on v7x's 64 MiB VMEM).
    vmem_limit = int(max(4 * 1024 * 1024, 4 * bytes_accessed))

    out_padded = pl.pallas_call(
        kernel,
        out_shape=jax.ShapeDtypeStruct((num_graphs, ep), jnp.float32),
        in_specs=[pl.BlockSpec(memory_space=pltpu.MemorySpace.VMEM)] * len(inputs),
        out_specs=pl.BlockSpec(memory_space=pltpu.MemorySpace.VMEM),
        scratch_shapes=[pltpu.VMEM((num_graphs, hp), jnp.float32)],   # max-pool rows
        compiler_params=pltpu.CompilerParams(vmem_limit_bytes=vmem_limit),
        cost_estimate=pl.CostEstimate(flops=int(flops),
                                      transcendentals=int(transcendentals),
                                      bytes_accessed=int(bytes_accessed)),
    )(*inputs)
    return out_padded[:, :embed_real]


# ------------------------- plain-JAX glue -------------------------

def build_adj(edge_index, n_pad):
    """Small-integer bf16 adjacency A[i, j] = #edges j -> i, plus exact f32 1/in-degree."""
    src, dst = edge_index[0], edge_index[1]
    a = jnp.zeros((n_pad, n_pad), jnp.float32).at[dst, src].add(1.0)
    deg = a.sum(axis=1, keepdims=True)
    inv_deg = jnp.where(deg > 0, 1.0 / jnp.maximum(deg, 1.0), 0.0)     # (n_pad, 1) f32
    return a.astype(jnp.bfloat16), inv_deg


def build_pool_mats(batch_vec, num_graphs, n_real, n_pad):
    onehot = (batch_vec[None, :] == jnp.arange(num_graphs)[:, None]).astype(jnp.float32)  # (G, n_real)
    counts = onehot.sum(axis=1, keepdims=True)
    pool_onehot = jnp.zeros((num_graphs, n_pad), jnp.float32).at[:, :n_real].set(onehot)
    inv_cnt = jnp.where(counts > 0, 1.0 / jnp.maximum(counts, 1.0), 0.0)                  # (G, 1) f32
    pmask_t = jnp.zeros((n_pad, num_graphs), jnp.float32).at[:n_real, :].set(onehot.T)
    nmask = jnp.zeros((n_pad, 1), jnp.float32).at[:n_real, :].set(1.0)
    return pool_onehot.astype(jnp.bfloat16), inv_cnt, pmask_t, nmask


def init_params(key, input_dim, hidden_dim, embed_dim, num_layers, hp, ep):
    """Packed, lane-padded synthetic parameters (weights pre-transposed, zero-padded)."""
    keys = iter(jax.random.split(key, 4 * num_layers + 1))
    wstack = jnp.zeros((num_layers * 4, hp, hp), jnp.float32)
    vstack = jnp.zeros((num_layers, 8, hp), jnp.float32)
    for l in range(num_layers):
        cin = input_dim if l == 0 else hidden_dim
        wl = jax.random.normal(next(keys), (cin, hidden_dim), jnp.float32) * 0.1
        wr = jax.random.normal(next(keys), (cin, hidden_dim), jnp.float32) * 0.1
        mw1 = jax.random.normal(next(keys), (hidden_dim, hidden_dim), jnp.float32) * 0.1
        mw2 = jax.random.normal(next(keys), (hidden_dim, hidden_dim), jnp.float32) * 0.1
        wstack = wstack.at[4 * l + 0, :cin, :hidden_dim].set(wl)
        wstack = wstack.at[4 * l + 1, :cin, :hidden_dim].set(wr)
        wstack = wstack.at[4 * l + 2, :hidden_dim, :hidden_dim].set(mw1)
        wstack = wstack.at[4 * l + 3, :hidden_dim, :hidden_dim].set(mw2)
        # vector rows: 0=bl 1=mb1 2=bn_gamma 3=bn_beta 4=mb2 5=ln_gamma 6=ln_beta 7=unused
        vstack = vstack.at[l, 2, :hidden_dim].set(1.0)
        vstack = vstack.at[l, 5, :hidden_dim].set(1.0)
    w_out = jax.random.normal(next(keys), (2 * hidden_dim, embed_dim), jnp.float32) * 0.1
    wout = jnp.zeros((2, hp, ep), jnp.float32)
    wout = wout.at[0, :hidden_dim, :embed_dim].set(w_out[:hidden_dim])   # max-pool half
    wout = wout.at[1, :hidden_dim, :embed_dim].set(w_out[hidden_dim:])   # mean-pool half
    bout = jnp.zeros((1, ep), jnp.float32)
    return wstack.astype(jnp.bfloat16), vstack, wout.astype(jnp.bfloat16), bout


if __name__ == "__main__":
    N_REAL, INPUT_DIM, HIDDEN, EMBED, NUM_LAYERS, NUM_GRAPHS = 16, 8, 32, 16, 2, 2
    HP, EP = 128, 128                         # lane-padded hidden / embed widths
    N = _round_up(N_REAL, 8)                  # sublane-padded node count

    key = jax.random.PRNGKey(0)
    kx, kp = jax.random.split(key)

    # Two graphs of 8 nodes each, bidirectional ring edges inside each graph.
    batch_vec = jnp.array([0] * 8 + [1] * 8, dtype=jnp.int32)
    src, dst = [], []
    for g in range(NUM_GRAPHS):
        base = g * 8
        for i in range(8):
            j = (i + 1) % 8
            src += [base + i, base + j]
            dst += [base + j, base + i]
    edge_index = jnp.array([src, dst], dtype=jnp.int32)   # (2, 32)

    x_real = jax.random.normal(kx, (N_REAL, INPUT_DIM), dtype=jnp.float32)
    x = jnp.zeros((N, HP), jnp.float32).at[:N_REAL, :INPUT_DIM].set(x_real)

    adj, inv_deg = build_adj(edge_index, N)
    pool_onehot, inv_cnt, pool_mask_t, nmask = build_pool_mats(batch_vec, NUM_GRAPHS, N_REAL, N)
    wstack, vstack, wout, bout = init_params(kp, INPUT_DIM, HIDDEN, EMBED, NUM_LAYERS, HP, EP)

    out = graphsage_forward(x, adj, inv_deg, pool_onehot, inv_cnt, pool_mask_t, nmask,
                            wstack, vstack, wout, bout,
                            num_layers=NUM_LAYERS, hidden_real=HIDDEN, embed_real=EMBED)
    out = jax.block_until_ready(out)
    assert out.shape == (NUM_GRAPHS, EMBED)
    assert bool(jnp.all(jnp.isfinite(out)))
    print("KERNEL_OK")
</pallas_src>

<mosaic_0001>
module attributes {stable_mosaic.version = 11 : i64} {
  func.func @_graphsage_kernel(%arg0: memref<16x128xf32, #tpu.memory_space<vmem>>, %arg1: memref<16x16xbf16, #tpu.memory_space<vmem>>, %arg2: memref<16x1xf32, #tpu.memory_space<vmem>>, %arg3: memref<2x16xbf16, #tpu.memory_space<vmem>>, %arg4: memref<2x1xf32, #tpu.memory_space<vmem>>, %arg5: memref<16x2xf32, #tpu.memory_space<vmem>>, %arg6: memref<16x1xf32, #tpu.memory_space<vmem>>, %arg7: memref<8x128x128xbf16, #tpu.memory_space<vmem>>, %arg8: memref<2x8x128xf32, #tpu.memory_space<vmem>>, %arg9: memref<2x128x128xbf16, #tpu.memory_space<vmem>>, %arg10: memref<1x128xf32, #tpu.memory_space<vmem>>, %arg11: memref<2x128xf32, #tpu.memory_space<vmem>>, %arg12: memref<2x128xf32, #tpu.memory_space<vmem>>) attributes {dimension_semantics = [], scalar_prefetch = 0 : i64, scratch_operands = 1 : i64, tpu.core_type = #tpu.core_type<tc>} {
    %c0 = arith.constant 0 : index
    %c0_0 = arith.constant 0 : index
    %0 = vector.load %arg1[%c0, %c0_0] : memref<16x16xbf16, #tpu.memory_space<vmem>>, vector<16x16xbf16>
    %c0_1 = arith.constant 0 : index
    %c0_2 = arith.constant 0 : index
    %1 = vector.load %arg2[%c0_1, %c0_2] : memref<16x1xf32, #tpu.memory_space<vmem>>, vector<16x1xf32>
    %c0_3 = arith.constant 0 : index
    %c0_4 = arith.constant 0 : index
    %2 = vector.load %arg6[%c0_3, %c0_4] : memref<16x1xf32, #tpu.memory_space<vmem>>, vector<16x1xf32>
    %cst = arith.constant dense<0.000000e+00> : vector<1xf32>
    %3 = vector.multi_reduction <add>, %2, %cst [0] : vector<16x1xf32> to vector<1xf32>
    %4 = vector.shape_cast %3 : vector<1xf32> to vector<1x1xf32>
    %cst_5 = arith.constant 1.000000e+00 : f32
    %5 = vector.broadcast %cst_5 : f32 to vector<1x1xf32>
    %6 = arith.maximumf %4, %5 : vector<1x1xf32>
    %cst_6 = arith.constant 1.000000e+00 : f32
    %7 = vector.broadcast %cst_6 : f32 to vector<1x1xf32>
    %8 = arith.divf %7, %6 : vector<1x1xf32>
    %9 = tpu.iota {dimensions = array<i32: 1>} : vector<1x128xi32>
    %c32_i32 = arith.constant 32 : i32
    %10 = vector.broadcast %c32_i32 : i32 to vector<1x128xi32>
    %11 = arith.cmpi slt, %9, %10 : vector<1x128xi32>
    %12 = arith.extui %11 : vector<1x128xi1> to vector<1x128xi32>
    %13 = arith.sitofp %12 : vector<1x128xi32> to vector<1x128xf32>
    %c0_7 = arith.constant 0 : index
    %c0_8 = arith.constant 0 : index
    %14 = vector.load %arg0[%c0_7, %c0_8] : memref<16x128xf32, #tpu.memory_space<vmem>>, vector<16x128xf32>
    %cst_9 = arith.constant 3.125000e-02 : f32
    %c0_i32 = arith.constant 0 : i32
    %c2_i32 = arith.constant 2 : i32
    %15 = arith.addi %c0_i32, %c2_i32 : i32
    %c1_i32 = arith.constant 1 : i32
    %16 = scf.for %arg13 = %c0_i32 to %15 step %c1_i32 iter_args(%arg14 = %14) -> (vector<16x128xf32>)  : i32 {
      %c4_i32 = arith.constant 4 : i32
      %72 = arith.muli %c4_i32, %arg13 : i32
      %c0_i32_49 = arith.constant 0 : i32
      %73 = arith.addi %72, %c0_i32_49 : i32
      %74 = arith.index_cast %73 : i32 to index
      %c0_50 = arith.constant 0 : index
      %c0_51 = arith.constant 0 : index
      %75 = vector.load %arg7[%74, %c0_50, %c0_51] : memref<8x128x128xbf16, #tpu.memory_space<vmem>>, vector<1x128x128xbf16>
      %76 = vector.shape_cast %75 : vector<1x128x128xbf16> to vector<128x128xbf16>
      %c4_i32_52 = arith.constant 4 : i32
      %77 = arith.muli %c4_i32_52, %arg13 : i32
      %c1_i32_53 = arith.constant 1 : i32
      %78 = arith.addi %77, %c1_i32_53 : i32
      %79 = arith.index_cast %78 : i32 to index
      %c0_54 = arith.constant 0 : index
      %c0_55 = arith.constant 0 : index
      %80 = vector.load %arg7[%79, %c0_54, %c0_55] : memref<8x128x128xbf16, #tpu.memory_space<vmem>>, vector<1x128x128xbf16>
      %81 = vector.shape_cast %80 : vector<1x128x128xbf16> to vector<128x128xbf16>
      %c4_i32_56 = arith.constant 4 : i32
      %82 = arith.muli %c4_i32_56, %arg13 : i32
      %c2_i32_57 = arith.constant 2 : i32
      %83 = arith.addi %82, %c2_i32_57 : i32
      %84 = arith.index_cast %83 : i32 to index
      %c0_58 = arith.constant 0 : index
      %c0_59 = arith.constant 0 : index
      %85 = vector.load %arg7[%84, %c0_58, %c0_59] : memref<8x128x128xbf16, #tpu.memory_space<vmem>>, vector<1x128x128xbf16>
      %86 = vector.shape_cast %85 : vector<1x128x128xbf16> to vector<128x128xbf16>
      %c4_i32_60 = arith.constant 4 : i32
      %87 = arith.muli %c4_i32_60, %arg13 : i32
      %c3_i32 = arith.constant 3 : i32
      %88 = arith.addi %87, %c3_i32 : i32
      %89 = arith.index_cast %88 : i32 to index
      %c0_61 = arith.constant 0 : index
      %c0_62 = arith.constant 0 : index
      %90 = vector.load %arg7[%89, %c0_61, %c0_62] : memref<8x128x128xbf16, #tpu.memory_space<vmem>>, vector<1x128x128xbf16>
      %91 = vector.shape_cast %90 : vector<1x128x128xbf16> to vector<128x128xbf16>
      %92 = arith.index_cast %arg13 : i32 to index
      %c0_63 = arith.constant 0 : index
      %c0_64 = arith.constant 0 : index
      %93 = vector.load %arg8[%92, %c0_63, %c0_64] : memref<2x8x128xf32, #tpu.memory_space<vmem>>, vector<1x1x128xf32>
      %94 = vector.shape_cast %93 : vector<1x1x128xf32> to vector<1x128xf32>
      %95 = arith.index_cast %arg13 : i32 to index
      %c1_65 = arith.constant 1 : index
      %c0_66 = arith.constant 0 : index
      %96 = vector.load %arg8[%95, %c1_65, %c0_66] : memref<2x8x128xf32, #tpu.memory_space<vmem>>, vector<1x1x128xf32>
      %97 = vector.shape_cast %96 : vector<1x1x128xf32> to vector<1x128xf32>
      %98 = arith.index_cast %arg13 : i32 to index
      %c2 = arith.constant 2 : index
      %c0_67 = arith.constant 0 : index
      %99 = vector.load %arg8[%98, %c2, %c0_67] : memref<2x8x128xf32, #tpu.memory_space<vmem>>, vector<1x1x128xf32>
      %100 = vector.shape_cast %99 : vector<1x1x128xf32> to vector<1x128xf32>
      %101 = arith.index_cast %arg13 : i32 to index
      %c3 = arith.constant 3 : index
      %c0_68 = arith.constant 0 : index
      %102 = vector.load %arg8[%101, %c3, %c0_68] : memref<2x8x128xf32, #tpu.memory_space<vmem>>, vector<1x1x128xf32>
      %103 = vector.shape_cast %102 : vector<1x1x128xf32> to vector<1x128xf32>
      %104 = arith.index_cast %arg13 : i32 to index
      %c4 = arith.constant 4 : index
      %c0_69 = arith.constant 0 : index
      %105 = vector.load %arg8[%104, %c4, %c0_69] : memref<2x8x128xf32, #tpu.memory_space<vmem>>, vector<1x1x128xf32>
      %106 = vector.shape_cast %105 : vector<1x1x128xf32> to vector<1x128xf32>
      %107 = arith.index_cast %arg13 : i32 to index
      %c5 = arith.constant 5 : index
      %c0_70 = arith.constant 0 : index
      %108 = vector.load %arg8[%107, %c5, %c0_70] : memref<2x8x128xf32, #tpu.memory_space<vmem>>, vector<1x1x128xf32>
      %109 = vector.shape_cast %108 : vector<1x1x128xf32> to vector<1x128xf32>
      %110 = arith.index_cast %arg13 : i32 to index
      %c6 = arith.constant 6 : index
      %c0_71 = arith.constant 0 : index
      %111 = vector.load %arg8[%110, %c6, %c0_71] : memref<2x8x128xf32, #tpu.memory_space<vmem>>, vector<1x1x128xf32>
      %112 = vector.shape_cast %111 : vector<1x1x128xf32> to vector<1x128xf32>
      %113 = arith.truncf %arg14 : vector<16x128xf32> to vector<16x128xbf16>
      %cst_72 = arith.constant dense<0.000000e+00> : vector<16x128xf32>
      %114 = tpu.matmul %0, %113, %cst_72 {dimension_numbers = #tpu.dot_dimension_numbers<[1], [0], [0], [1], [0, 0, 1, 1], [], []>} : vector<16x16xbf16>, vector<16x128xbf16>, vector<16x128xf32> -> vector<16x128xf32>
      %115 = vector.broadcast %1 : vector<16x1xf32> to vector<16x128xf32>
      %116 = arith.mulf %114, %115 : vector<16x128xf32>
      %117 = arith.truncf %116 : vector<16x128xf32> to vector<16x128xbf16>
      %cst_73 = arith.constant dense<0.000000e+00> : vector<16x128xf32>
      %118 = tpu.matmul %117, %76, %cst_73 {dimension_numbers = #tpu.dot_dimension_numbers<[1], [0], [0], [1], [0, 0, 1, 1], [], []>} : vector<16x128xbf16>, vector<128x128xbf16>, vector<16x128xf32> -> vector<16x128xf32>
      %cst_74 = arith.constant dense<0.000000e+00> : vector<16x128xf32>
      %119 = tpu.matmul %113, %81, %cst_74 {dimension_numbers = #tpu.dot_dimension_numbers<[1], [0], [0], [1], [0, 0, 1, 1], [], []>} : vector<16x128xbf16>, vector<128x128xbf16>, vector<16x128xf32> -> vector<16x128xf32>
      %120 = arith.addf %118, %119 : vector<16x128xf32>
      %121 = vector.broadcast %94 : vector<1x128xf32> to vector<16x128xf32>
      %122 = arith.addf %120, %121 : vector<16x128xf32>
      %123 = arith.truncf %122 : vector<16x128xf32> to vector<16x128xbf16>
      %cst_75 = arith.constant dense<0.000000e+00> : vector<16x128xf32>
      %124 = tpu.matmul %123, %86, %cst_75 {dimension_numbers = #tpu.dot_dimension_numbers<[1], [0], [0], [1], [0, 0, 1, 1], [], []>} : vector<16x128xbf16>, vector<128x128xbf16>, vector<16x128xf32> -> vector<16x128xf32>
      %125 = vector.broadcast %97 : vector<1x128xf32> to vector<16x128xf32>
      %126 = arith.addf %124, %125 : vector<16x128xf32>
      %127 = vector.broadcast %2 : vector<16x1xf32> to vector<16x128xf32>
      %128 = arith.mulf %126, %127 : vector<16x128xf32>
      %cst_76 = arith.constant dense<0.000000e+00> : vector<128xf32>
      %129 = vector.multi_reduction <add>, %128, %cst_76 [0] : vector<16x128xf32> to vector<128xf32>
      %130 = vector.shape_cast %129 : vector<128xf32> to vector<1x128xf32>
      %131 = vector.broadcast %8 : vector<1x1xf32> to vector<1x128xf32>
      %132 = arith.mulf %130, %131 : vector<1x128xf32>
      %133 = vector.broadcast %132 : vector<1x128xf32> to vector<16x128xf32>
      %134 = arith.subf %126, %133 : vector<16x128xf32>
      %135 = vector.broadcast %2 : vector<16x1xf32> to vector<16x128xf32>
      %136 = arith.mulf %134, %135 : vector<16x128xf32>
      %137 = arith.mulf %136, %136 : vector<16x128xf32>
      %cst_77 = arith.constant dense<0.000000e+00> : vector<128xf32>
      %138 = vector.multi_reduction <add>, %137, %cst_77 [0] : vector<16x128xf32> to vector<128xf32>
      %139 = vector.shape_cast %138 : vector<128xf32> to vector<1x128xf32>
      %140 = vector.broadcast %8 : vector<1x1xf32> to vector<1x128xf32>
      %141 = arith.mulf %139, %140 : vector<1x128xf32>
      %142 = vector.broadcast %132 : vector<1x128xf32> to vector<16x128xf32>
      %143 = arith.subf %126, %142 : vector<16x128xf32>
      %cst_78 = arith.constant 9.99999974E-6 : f32
      %144 = vector.broadcast %cst_78 : f32 to vector<1x128xf32>
      %145 = arith.addf %141, %144 : vector<1x128xf32>
      %146 = math.rsqrt %145 : vector<1x128xf32>
      %147 = vector.broadcast %146 : vector<1x128xf32> to vector<16x128xf32>
      %148 = arith.mulf %143, %147 : vector<16x128xf32>
      %149 = vector.broadcast %100 : vector<1x128xf32> to vector<16x128xf32>
      %150 = arith.mulf %148, %149 : vector<16x128xf32>
      %151 = vector.broadcast %103 : vector<1x128xf32> to vector<16x128xf32>
      %152 = arith.addf %150, %151 : vector<16x128xf32>
      %cst_79 = arith.constant 0.000000e+00 : f32
      %153 = vector.broadcast %cst_79 : f32 to vector<16x128xf32>
      %154 = arith.maximumf %152, %153 : vector<16x128xf32>
      %155 = arith.truncf %154 : vector<16x128xf32> to vector<16x128xbf16>
      %cst_80 = arith.constant dense<0.000000e+00> : vector<16x128xf32>
      %156 = tpu.matmul %155, %91, %cst_80 {dimension_numbers = #tpu.dot_dimension_numbers<[1], [0], [0], [1], [0, 0, 1, 1], [], []>} : vector<16x128xbf16>, vector<128x128xbf16>, vector<16x128xf32> -> vector<16x128xf32>
      %157 = vector.broadcast %106 : vector<1x128xf32> to vector<16x128xf32>
      %158 = arith.addf %156, %157 : vector<16x128xf32>
      %cst_81 = arith.constant dense<0.000000e+00> : vector<16xf32>
      %159 = vector.multi_reduction <add>, %158, %cst_81 [1] : vector<16x128xf32> to vector<16xf32>
      %160 = vector.shape_cast %159 : vector<16xf32> to vector<16x1xf32>
      %161 = vector.broadcast %cst_9 : f32 to vector<16x1xf32>
      %162 = arith.mulf %160, %161 : vector<16x1xf32>
      %163 = vector.broadcast %162 : vector<16x1xf32> to vector<16x128xf32>
      %164 = arith.subf %158, %163 : vector<16x128xf32>
      %165 = vector.broadcast %13 : vector<1x128xf32> to vector<16x128xf32>
      %166 = arith.mulf %164, %165 : vector<16x128xf32>
      %167 = arith.mulf %166, %166 : vector<16x128xf32>
      %cst_82 = arith.constant dense<0.000000e+00> : vector<16xf32>
      %168 = vector.multi_reduction <add>, %167, %cst_82 [1] : vector<16x128xf32> to vector<16xf32>
      %169 = vector.shape_cast %168 : vector<16xf32> to vector<16x1xf32>
      %170 = vector.broadcast %cst_9 : f32 to vector<16x1xf32>
      %171 = arith.mulf %169, %170 : vector<16x1xf32>
      %172 = vector.broadcast %162 : vector<16x1xf32> to vector<16x128xf32>
      %173 = arith.subf %158, %172 : vector<16x128xf32>
      %cst_83 = arith.constant 9.99999974E-6 : f32
      %174 = vector.broadcast %cst_83 : f32 to vector<16x1xf32>
      %175 = arith.addf %171, %174 : vector<16x1xf32>
      %176 = math.rsqrt %175 : vector<16x1xf32>
      %177 = vector.broadcast %176 : vector<16x1xf32> to vector<16x128xf32>
      %178 = arith.mulf %173, %177 : vector<16x128xf32>
      %179 = vector.broadcast %109 : vector<1x128xf32> to vector<16x128xf32>
      %180 = arith.mulf %178, %179 : vector<16x128xf32>
      %181 = vector.broadcast %112 : vector<1x128xf32> to vector<16x128xf32>
      %182 = arith.addf %180, %181 : vector<16x128xf32>
      %cst_84 = arith.constant 0.000000e+00 : f32
      %183 = vector.broadcast %cst_84 : f32 to vector<16x128xf32>
      %184 = arith.cmpf oge, %182, %183 : vector<16x128xf32>
      %cst_85 = arith.constant 1.000000e-01 : f32
      %185 = vector.broadcast %cst_85 : f32 to vector<16x128xf32>
      %186 = arith.mulf %185, %182 : vector<16x128xf32>
      %187 = arith.select %184, %182, %186 : vector<16x128xi1>, vector<16x128xf32>
      scf.yield %187 : vector<16x128xf32>
    }
    %c2_i32_10 = arith.constant 2 : i32
    %17 = arith.truncf %16 : vector<16x128xf32> to vector<16x128xbf16>
    %c0_11 = arith.constant 0 : index
    %c0_12 = arith.constant 0 : index
    %18 = vector.load %arg3[%c0_11, %c0_12] : memref<2x16xbf16, #tpu.memory_space<vmem>>, vector<2x16xbf16>
    %cst_13 = arith.constant dense<0.000000e+00> : vector<2x128xf32>
    %19 = tpu.matmul %18, %17, %cst_13 {dimension_numbers = #tpu.dot_dimension_numbers<[1], [0], [0], [1], [0, 0, 1, 1], [], []>} : vector<2x16xbf16>, vector<16x128xbf16>, vector<2x128xf32> -> vector<2x128xf32>
    %c0_14 = arith.constant 0 : index
    %c0_15 = arith.constant 0 : index
    %20 = vector.load %arg4[%c0_14, %c0_15] : memref<2x1xf32, #tpu.memory_space<vmem>>, vector<2x1xf32>
    %21 = vector.broadcast %20 : vector<2x1xf32> to vector<2x128xf32>
    %22 = arith.mulf %19, %21 : vector<2x128xf32>
    %c0_16 = arith.constant 0 : index
    %c0_17 = arith.constant 0 : index
    %23 = vector.load %arg5[%c0_16, %c0_17] : memref<16x2xf32, #tpu.memory_space<vmem>>, vector<16x2xf32>
    %24 = vector.extract_strided_slice %23 {offsets = [0, 0], sizes = [16, 1], strides = [1, 1]} : vector<16x2xf32> to vector<16x1xf32>
    %cst_18 = arith.constant 0.000000e+00 : f32
    %25 = vector.broadcast %cst_18 : f32 to vector<16x1xf32>
    %26 = arith.cmpf ogt, %24, %25 : vector<16x1xf32>
    %cst_19 = arith.constant -1.000000e+30 : f32
    %27 = vector.shape_cast %26 : vector<16x1xi1> to vector<16x1xi1>
    %28 = vector.broadcast %27 : vector<16x1xi1> to vector<16x128xi1>
    %29 = vector.broadcast %cst_19 : f32 to vector<16x128xf32>
    %30 = arith.select %28, %16, %29 : vector<16x128xi1>, vector<16x128xf32>
    %cst_20 = arith.constant dense<0xFF800000> : vector<128xf32>
    %31 = vector.multi_reduction <maximumf>, %30, %cst_20 [0] : vector<16x128xf32> to vector<128xf32>
    %32 = vector.shape_cast %31 : vector<128xf32> to vector<1x128xf32>
    %c0_21 = arith.constant 0 : index
    %c0_22 = arith.constant 0 : index
    %33 = vector.load %arg4[%c0_21, %c0_22] : memref<2x1xf32, #tpu.memory_space<vmem>>, vector<1x1xf32>
    %cst_23 = arith.constant 0.000000e+00 : f32
    %34 = vector.broadcast %cst_23 : f32 to vector<1x1xf32>
    %35 = arith.cmpf ogt, %33, %34 : vector<1x1xf32>
    %cst_24 = arith.constant 0.000000e+00 : f32
    %36 = vector.shape_cast %35 : vector<1x1xi1> to vector<1x1xi1>
    %37 = vector.broadcast %36 : vector<1x1xi1> to vector<1x128xi1>
    %38 = vector.broadcast %cst_24 : f32 to vector<1x128xf32>
    %39 = arith.select %37, %32, %38 : vector<1x128xi1>, vector<1x128xf32>
    %c0_25 = arith.constant 0 : index
    %c0_26 = arith.constant 0 : index
    %40 = vector.load %arg12[%c0_25, %c0_26] : memref<2x128xf32, #tpu.memory_space<vmem>>, vector<1x128xf32>
    tpu.vector_store %arg12[%c0_25, %c0_26], %39 {strides = array<i32>} : memref<2x128xf32, #tpu.memory_space<vmem>>, vector<1x128xf32>,
    %41 = vector.extract_strided_slice %23 {offsets = [0, 1], sizes = [16, 1], strides = [1, 1]} : vector<16x2xf32> to vector<16x1xf32>
    %cst_27 = arith.constant 0.000000e+00 : f32
    %42 = vector.broadcast %cst_27 : f32 to vector<16x1xf32>
    %43 = arith.cmpf ogt, %41, %42 : vector<16x1xf32>
    %cst_28 = arith.constant -1.000000e+30 : f32
    %44 = vector.shape_cast %43 : vector<16x1xi1> to vector<16x1xi1>
    %45 = vector.broadcast %44 : vector<16x1xi1> to vector<16x128xi1>
    %46 = vector.broadcast %cst_28 : f32 to vector<16x128xf32>
    %47 = arith.select %45, %16, %46 : vector<16x128xi1>, vector<16x128xf32>
    %cst_29 = arith.constant dense<0xFF800000> : vector<128xf32>
    %48 = vector.multi_reduction <maximumf>, %47, %cst_29 [0] : vector<16x128xf32> to vector<128xf32>
    %49 = vector.shape_cast %48 : vector<128xf32> to vector<1x128xf32>
    %c1 = arith.constant 1 : index
    %c0_30 = arith.constant 0 : index
    %50 = vector.load %arg4[%c1, %c0_30] : memref<2x1xf32, #tpu.memory_space<vmem>>, vector<1x1xf32>
    %cst_31 = arith.constant 0.000000e+00 : f32
    %51 = vector.broadcast %cst_31 : f32 to vector<1x1xf32>
    %52 = arith.cmpf ogt, %50, %51 : vector<1x1xf32>
    %cst_32 = arith.constant 0.000000e+00 : f32
    %53 = vector.shape_cast %52 : vector<1x1xi1> to vector<1x1xi1>
    %54 = vector.broadcast %53 : vector<1x1xi1> to vector<1x128xi1>
    %55 = vector.broadcast %cst_32 : f32 to vector<1x128xf32>
    %56 = arith.select %54, %49, %55 : vector<1x128xi1>, vector<1x128xf32>
    %c1_33 = arith.constant 1 : index
    %c0_34 = arith.constant 0 : index
    %57 = vector.load %arg12[%c1_33, %c0_34] : memref<2x128xf32, #tpu.memory_space<vmem>>, vector<1x128xf32>
    tpu.vector_store %arg12[%c1_33, %c0_34], %56 {strides = array<i32>} : memref<2x128xf32, #tpu.memory_space<vmem>>, vector<1x128xf32>,
    %c0_35 = arith.constant 0 : index
    %c0_36 = arith.constant 0 : index
    %58 = vector.load %arg12[%c0_35, %c0_36] : memref<2x128xf32, #tpu.memory_space<vmem>>, vector<2x128xf32>
    %59 = arith.truncf %58 : vector<2x128xf32> to vector<2x128xbf16>
    %c0_37 = arith.constant 0 : index
    %c0_38 = arith.constant 0 : index
    %c0_39 = arith.constant 0 : index
    %60 = vector.load %arg9[%c0_37, %c0_38, %c0_39] : memref<2x128x128xbf16, #tpu.memory_space<vmem>>, vector<1x128x128xbf16>
    %61 = vector.shape_cast %60 : vector<1x128x128xbf16> to vector<128x128xbf16>
    %cst_40 = arith.constant dense<0.000000e+00> : vector<2x128xf32>
    %62 = tpu.matmul %59, %61, %cst_40 {dimension_numbers = #tpu.dot_dimension_numbers<[1], [0], [0], [1], [0, 0, 1, 1], [], []>} : vector<2x128xbf16>, vector<128x128xbf16>, vector<2x128xf32> -> vector<2x128xf32>
    %63 = arith.truncf %22 : vector<2x128xf32> to vector<2x128xbf16>
    %c1_41 = arith.constant 1 : index
    %c0_42 = arith.constant 0 : index
    %c0_43 = arith.constant 0 : index
    %64 = vector.load %arg9[%c1_41, %c0_42, %c0_43] : memref<2x128x128xbf16, #tpu.memory_space<vmem>>, vector<1x128x128xbf16>
    %65 = vector.shape_cast %64 : vector<1x128x128xbf16> to vector<128x128xbf16>
    %cst_44 = arith.constant dense<0.000000e+00> : vector<2x128xf32>
    %66 = tpu.matmul %63, %65, %cst_44 {dimension_numbers = #tpu.dot_dimension_numbers<[1], [0], [0], [1], [0, 0, 1, 1], [], []>} : vector<2x128xbf16>, vector<128x128xbf16>, vector<2x128xf32> -> vector<2x128xf32>
    %67 = arith.addf %62, %66 : vector<2x128xf32>
    %c0_45 = arith.constant 0 : index
    %c0_46 = arith.constant 0 : index
    %68 = vector.load %arg10[%c0_45, %c0_46] : memref<1x128xf32, #tpu.memory_space<vmem>>, vector<1x128xf32>
    %69 = vector.broadcast %68 : vector<1x128xf32> to vector<2x128xf32>
    %70 = arith.addf %67, %69 : vector<2x128xf32>
    %c0_47 = arith.constant 0 : index
    %c0_48 = arith.constant 0 : index
    %71 = vector.load %arg11[%c0_47, %c0_48] : memref<2x128xf32, #tpu.memory_space<vmem>>, vector<2x128xf32>
    tpu.vector_store %arg11[%c0_47, %c0_48], %70 {strides = array<i32>} : memref<2x128xf32, #tpu.memory_space<vmem>>, vector<2x128xf32>,
    return
  }
}

</mosaic_0001>

<bundles_post_ra>
// kernel: tpu_custom_call.1
= control target key start
LH: loop header
LB: loop body
LE: loop exit
PB: predicated region body
PF: predicated region fallthrough
CT: control target
= control target key end

     0   :  { %16 = vsyncpa [#allocation4], 0  ;;  %s1901_s0 = inlined_call_operand.vmem [shape: f32[16,128], index: 0, kind: input, shape index: {}]   ;;  %s1902_s1 = inlined_call_operand.vmem [shape: bf16[16,16], index: 1, kind: input, shape index: {}]   ;;  %s1903_s2 = inlined_call_operand.vmem [shape: f32[16,1], index: 2, kind: input, shape index: {}]   ;;  %s1904_s3 = inlined_call_operand.vmem [shape: bf16[2,16], index: 3, kind: input, shape index: {}]   ;;  %s1905_s4 = inlined_call_operand.vmem [shape: f32[2,1], index: 4, kind: input, shape index: {}]   ;;  %s1906_s5 = inlined_call_operand.vmem [shape: f32[16,2], index: 5, kind: input, shape index: {}]   ;;  %s1907_s6 = inlined_call_operand.vmem [shape: f32[16,1], index: 6, kind: input, shape index: {}]   ;;  %s1908_s7 = inlined_call_operand.hbm [shape: bf16[8,128,128], index: 7, kind: input, shape index: {}]   ;;  %s1909_s8 = inlined_call_operand.vmem [shape: f32[2,8,128], index: 8, kind: input, shape index: {}]   ;;  %s1910_s9 = inlined_call_operand.hbm [shape: bf16[2,128,128], index: 9, kind: input, shape index: {}]   ;;  %s1911_s10 = inlined_call_operand.vmem [shape: f32[1,128], index: 10, kind: input, shape index: {}]   ;;  %s1912_s11 = inlined_call_operand.hbm [shape: f32[2,128], index: 11, kind: output, shape index: {}]  }
   0x1   :  { %17 = vsyncpa [#allocation7], 0 }
   0x2   :  { %18 = vsyncpa [#allocation5], 0  ;;  %s1601_s17 = smov [#allocation3]  }
   0x3   :  { %s38_s18 = sshll.u32 %s1601_s17, 4  ;;  %s39_s18 = int_to_ptr.vmem [resolvable:$true] %s38_s18 }
   0x4   :  { %s1519_s19 = scalar_lea.vmem %s39_s18, 8192  ;;  %p1524_p1 = scmp.lt.s32.totalorder %s39_s18, %s39_s18 }
   0x5   :  { %p1520_p0 = scmp.ne.s32.totalorder %s39_s18, %s1519_s19  ;;  %p1525_p2 = scmp.lt.s32.totalorder %s1519_s19, %s1519_s19 }
   0x7   :  { %p1526_p3 = por %p1525_p2, %p1524_p1 }
   0x9   :  { %p1527_p4 = pnand %p1526_p3, %p1520_p0 }
   0xb   :  { %1530 = shalt.err (!%p1527_p4)
}
   0xc   :  { %s1602_s20 = smov 64   ;;  %s1603_s21 = smov 4  }
   0xd   :  { %44 = dma.hbm_to_vmem [thread:$0]  %s1908_s7, 8192, %s39_s18, [#allocation4], %s1602_s20, %s1602_s20, %s1603_s21  }
   0xe   :  { %s1604_s24 = smov [#allocation6]  }
   0xf   :  { %s52_s25 = sshll.u32 %s1604_s24, 4  ;;  %s53_s25 = int_to_ptr.vmem [resolvable:$true] %s52_s25 }
  0x10   :  { %s1539_s26 = scalar_lea.vmem %s53_s25, 2048  ;;  %p1544_p6 = scmp.lt.s32.totalorder %s53_s25, %s53_s25 }
  0x11   :  { %p1540_p5 = scmp.ne.s32.totalorder %s53_s25, %s1539_s26  ;;  %p1545_p7 = scmp.lt.s32.totalorder %s1539_s26, %s1539_s26 }
  0x13   :  { %p1546_p8 = por %p1545_p7, %p1544_p6 }
  0x15   :  { %p1547_p9 = pnand %p1546_p8, %p1540_p5 }
  0x17   :  { %1550 = shalt.err (!%p1547_p9)
}
  0x18   :  { %58 = dma.hbm_to_vmem [thread:$0]  %s1910_s9, 2048, %s53_s25, [#allocation7], %s1602_s20, %s1602_s20, %s1603_s21  }
  0x19   :  { %1583 = dma.done.wait [#allocation4], 8192  }
  0x1a   :  { %1584 = vsyncadd [#allocation4], 4294959104 }
  0x1b   :  { %1585 = dma.done.wait [#allocation7], 2048  }
  0x1c   :  { %1586 = vsyncadd [#allocation7], 4294965248  ;;  %v87_v0 = vlaneseq  ;;  %v1605_v2 = vmov 0.0   ;;  %vm74_vm1 = vcmask 7168   ;;  %v1685_v4 = vld [vmem:[%s1902_s1] sm:$0xf] }
  0x1d   :  { %v1690_v5 = vld [vmem:[%s1902_s1 + $0x4] sm:$0xf]  ;;  %v1700_v7 = vld [vmem:[%s1903_s2 + $0x8] sm:$0xff] }
  0x1e   :  { %v88_v1 = vand.u32 127, %v87_v0  ;;  %v1695_v6 = vld [vmem:[%s1903_s2] sm:$0xff]  ;;  %v1710_v9 = vld [vmem:[%s1907_s6 + $0x8] sm:$0xff] }
  0x1f   :  { %v1705_v8 = vld [vmem:[%s1907_s6] sm:$0xff]  ;;  %v76_v11 = vsel %vm74_vm1, %v1710_v9, 0.0  ;;  %v93_v13 = vld [vmem:[%s1901_s0 + $0x8] sm:$0xff]   ;;  %s1726_s6 = smov 0  }
  0x20   :  { %vm89_vm0 = vcmp.lt.s32.totalorder %v88_v1, 32  ;;  %v75_v10 = vsel %vm74_vm1, %v1705_v8, 0.0  ;;  %v92_v12 = vld [vmem:[%s1901_s0] sm:$0xff]  }
  0x21   :  { %v1680_v3 = vsel %vm89_vm0, 1.0, %v1605_v2  ;;  %v77_v14 = vadd.f32 %v76_v11, %v75_v10 }
  0x23   :  { %v78_v15 = vrot.slane %v77_v14, 4 }
  0x25   :  { %v79_v16 = vadd.f32 %v78_v15, %v77_v14 }
  0x27   :  { %v80_v17 = vrot.slane %v79_v16, 2 }
  0x29   :  { %v81_v18 = vadd.f32 %v80_v17, %v79_v16 }
  0x2b   :  { %v82_v19 = vrot.slane %v81_v18, 1 }
  0x2d   :  { %v83_v20 = vadd.f32 %v82_v19, %v81_v18 }
  0x2f   :  { %v84_v21 = vmax.f32 %v83_v20, 1.0 }
  0x31   :  { %1450 = vrcp.f32 %v84_v21 }
  0x3e   :  { %v1720_v22 = vpop.eup %1450 }
  0x3f LB: > { %v1606_v23 = vmov 0.0   ;;  %vm1607_vm2 = vmmov 0   ;;  %v191_v24 = vpack.c.bf16 %v1591_v13, %v1595_v12  ;;  %s1220_s0 = sshll.u32 %s1599_s6, 8  ;;  %v1160_v25 = vcombine.low %v1685_v4, %v1690_v5  ;;  %s1159_s23 = sshll.u32 %s1599_s6, 3  ;;  %s1599_s6 = sphi %s1726_s6, %s99_s6   ;;  %v1595_v12 = vphi %v92_v12, %v1916_v12   ;;  %v1591_v13 = vphi %v93_v13, %v1915_v13  }
  0x40   : > { %1282 = vmatprep.subr.bf16.mxu0 %v1606_v23  ;;  %1284 = vmatprep.mubr.msk.bf16.mxu0 %vm1607_vm2, %v1606_v23  ;;  %v1608_v26 = vmov 0   ;;  %vm197_vm3 = vcmask 130048   ;;  %s1743_s22 = scalar_lea.vmem [#allocation3], %s1220_s0  ;;  %s1808_s26 = scalar_lea.vmem %s1909_s8, %s1159_s23 }
  0x41   : > { %1288 = vmatprep.subr.bf16.mxu1 %v1606_v23  ;;  %1304 = vmatprep.mubr.msk.bf16.mxu1 %vm1607_vm2, %v1606_v23  ;;  %v1454_v27 = vld [vmem:[%s1743_s22 + $0x78] sm:$0xff]   ;;  %v1455_v28 = vld [vmem:[%s1743_s22 + $0x70] sm:$0xff]   ;;  %v1457_v31 = vld [vmem:[%s1743_s22 + $0x68] sm:$0xff]   ;;  %s99_s6 = sadd.s32 1, %s1599_s6  }
  0x42   : > { %1452 = vset.pattern.permute.xlu0 %v1608_v26  ;;  %1453 = vset.pattern.permute.xlu1 %v1608_v26  ;;  %v1456_v29 = vld [vmem:[%s1743_s22 + $0x38] sm:$0xff]   ;;  %v1458_v30 = vld [vmem:[%s1743_s22 + $0x30] sm:$0xff]   ;;  %v1460_v32 = vld [vmem:[%s1743_s22 + $0x28] sm:$0xff]   ;;  %p96_p10 = scmp.ge.s32.totalorder %s99_s6, 2  }
  0x43   : > { %1283 = vmatpush3.bf16.msra.mxu0 %v191_v24  ;;  %244 = vperm.xlu0 %1452, %v1695_v6   ;;  %v1459_v33 = vld [vmem:[%s1743_s22 + $0x60] sm:$0xff]   ;;  %v1461_v34 = vld [vmem:[%s1743_s22 + $0x58] sm:$0xff]   ;;  %v1463_v37 = vld [vmem:[%s1743_s22 + $0x50] sm:$0xff]   ;;  %vm1609_vm6 = vmmov (%p96_p10), 0   ;;  %s1612_s16 = smov (%p96_p10), [#allocation8]  }
  0x44   : > { %1308 = vmatprep.subr.bf16.mxu0 %v1606_v23  ;;  %535 = vperm.xlu1 %1453, %v1705_v8   ;;  %v1462_v35 = vld [vmem:[%s1743_s22 + $0x20] sm:$0xff]   ;;  %v1464_v36 = vld [vmem:[%s1743_s22 + $0x18] sm:$0xff]   ;;  %v1466_v38 = vld [vmem:[%s1743_s22 + $0x10] sm:$0xff]   ;;  %s1064_s17 = sshll.u32 (%p96_p10), %s1612_s16, 4  ;;  %s1065_s17 = int_to_ptr.vmem [resolvable:$true] %s1064_s17 }
  0x45   : > { %1289 = vmatpush3.bf16.msra.mxu1 %v1454_v27  ;;  %v1465_v39 = vld [vmem:[%s1743_s22 + $0x48] sm:$0xff]   ;;  %v1467_v40 = vld [vmem:[%s1743_s22 + $0x40] sm:$0xff]   ;;  %v1470_v43 = vld [vmem:[%s1743_s22 + $0xb8] sm:$0xff]   ;;  %s1551_s18 = scalar_lea.vmem (%p96_p10), %s1065_s17, 32  ;;  %p1556_p12 = scmp.lt.s32.totalorder (%p96_p10), %s1065_s17, %s1065_s17 }
  0x46   : > { %1285 = vmatmul.mubr.msk.bf16.vlgmr.msra.gmra.mxu0 %vm197_vm3, %v1160_v25  ;;  %1290 = vmatprep.subr.bf16.mxu1 %v1606_v23  ;;  %v1468_v41 = vld [vmem:[%s1743_s22 + $0x8] sm:$0xff]   ;;  %v1469_v42 = vld [vmem:[%s1743_s22] sm:$0xff]   ;;  %v1471_v44 = vld [vmem:[%s1743_s22 + $0xb0] sm:$0xff]   ;;  %p1552_p11 = scmp.ne.s32.totalorder (%p96_p10), %s1065_s17, %s1551_s18  ;;  %p1557_p13 = scmp.lt.s32.totalorder (%p96_p10), %s1551_s18, %s1551_s18 }
  0x47   : > { %249 = vperm.xlu0 %1452, %v1700_v7   ;;  %1309 = vmatpush3.bf16.msra.mxu0 %v1456_v29  ;;  %v1472_v45 = vld [vmem:[%s1743_s22 + $0xa8] sm:$0xff]   ;;  %v1473_v46 = vld [vmem:[%s1743_s22 + $0xa0] sm:$0xff]   ;;  %v1474_v47 = vld [vmem:[%s1743_s22 + $0x98] sm:$0xff]   ;;  %v1611_v7 = vmov (%p96_p10), 0  }
  0x48   : > { %1310 = vmatprep.subr.bf16.mxu0 %v1606_v23  ;;  %1324 = vmatprep.mubr.msk.bf16.mxu0 %vm1607_vm2, %v1606_v23  ;;  %v1475_v60 = vld [vmem:[%s1743_s22 + $0x90] sm:$0xff]   ;;  %v1476_v62 = vld [vmem:[%s1743_s22 + $0x88] sm:$0xff]   ;;  %v1477_v63 = vld [vmem:[%s1743_s22 + $0x80] sm:$0xff]   ;;  %p1558_p0 = por (%p96_p10), %p1557_p13, %p1556_p12 }
  0x49   : > { %1291 = vmatpush3.bf16.msra.mxu1 %v1455_v28  ;;  %540 = vperm.xlu1 %1453, %v1710_v9   ;;  %v1178_v11 = vld [vmem:[%s1808_s26] ss:$0 sm:$0xff]  ;;  %v1478_v18 = vld [vmem:[%s1743_s22 + $0xf8] sm:$0xff]   ;;  %v1479_v19 = vld [vmem:[%s1743_s22 + $0xf0] sm:$0xff]  }
  0x4a   : > { %1292 = vmatprep.subr.bf16.mxu1 %v1606_v23  ;;  %v1480_v20 = vld [vmem:[%s1743_s22 + $0xe8] sm:$0xff]   ;;  %v1481_v21 = vld [vmem:[%s1743_s22 + $0xe0] sm:$0xff]   ;;  %v1483_v25 = vld [vmem:[%s1743_s22 + $0xd0] sm:$0xff]   ;;  %p1559_p1 = pnand (%p96_p10), %p1558_p0, %p1552_p11 }
  0x4b   : > { %554 = vperm.xlu0 %1452, %v1720_v22   ;;  %1311 = vmatpush3.bf16.msra.mxu0 %v1458_v30  ;;  %v1484_v26 = vld [vmem:[%s1743_s22 + $0xc8] sm:$0xff]   ;;  %v1485_v27 = vld [vmem:[%s1743_s22 + $0xc0] sm:$0xff]  }
  0x4c   : > { %1312 = vmatprep.subr.bf16.mxu0 %v1606_v23  ;;  %v1179_v29 = vld [vmem:[%s1808_s26 + $0x1] ss:$0 sm:$0xff]  ;;  %v802_v5 = vld [vmem:[%s1905_s4] sm:$0x1] (%p96_p10) }
  0x4d   : > { %1293 = vmatpush3.bf16.msra.mxu1 %v1457_v31  ;;  %v828_v4 = vld [vmem:[%s1905_s4 + $0x1] sm:$0x1] (%p96_p10)  ;;  %v727_v6 = vld [vmem:[%s1904_s3] sm:$0x1] (%p96_p10)  ;;  %vm803_vm10 = vcmp.gt.f32.partialorder (%p96_p10), %v802_v5, 0.0 }
  0x4e   : > { %1294 = vmatprep.subr.bf16.mxu1 %v1606_v23  ;;  %vm829_vm9 = vcmp.gt.f32.partialorder (%p96_p10), %v828_v4, 0.0  ;;  %v1218_v5 = vld [vmem:[%s1911_s10] ss:$0 sm:$0xff] (%p96_p10) }
  0x4f   : > { %1313 = vmatpush3.bf16.msra.mxu0 %v1460_v32  ;;  %1492 = vset.pattern.permute.xlu0 (%p96_p10), %v1611_v7  ;;  %v830_v22 = vsel (%p96_p10), %vm829_vm9, 1, %v1611_v7 }
  0x50   : > { %1314 = vmatprep.subr.bf16.mxu0 %v1606_v23 }
  0x51   : > { %1295 = vmatpush3.bf16.msra.mxu1 %v1459_v33 }
  0x52   : > { %1296 = vmatprep.subr.bf16.mxu1 %v1606_v23 }
  0x53   : > { %1315 = vmatpush3.bf16.msra.mxu0 %v1462_v35 }
  0x54   : > { %1316 = vmatprep.subr.bf16.mxu0 %v1606_v23 }
  0x55   : > { %1297 = vmatpush3.bf16.msra.mxu1 %v1461_v34 }
  0x56   : > { %1298 = vmatprep.subr.bf16.mxu1 %v1606_v23 }
  0x57   : > { %1317 = vmatpush3.bf16.msra.mxu0 %v1464_v36 }
  0x58   : > { %1318 = vmatprep.subr.bf16.mxu0 %v1606_v23 }
  0x59   : > { %1299 = vmatpush3.bf16.msra.mxu1 %v1463_v37 }
  0x5a   : > { %1300 = vmatprep.subr.bf16.mxu1 %v1606_v23 }
  0x5b   : > { %1319 = vmatpush3.bf16.msra.mxu0 %v1466_v38 }
  0x5c   : > { %1320 = vmatprep.subr.bf16.mxu0 %v1606_v23 }
  0x5d   : > { %1301 = vmatpush3.bf16.msra.mxu1 %v1465_v39 }
  0x5e   : > { %1302 = vmatprep.subr.bf16.mxu1 %v1606_v23 }
  0x5f   : > { %1321 = vmatpush3.bf16.msra.mxu0 %v1468_v41 }
  0x60   : > { %1322 = vmatprep.subr.bf16.mxu0 %v1606_v23 }
  0x61   : > { %1303 = vmatpush3.bf16.msra.mxu1 %v1467_v40 }
  0x62   : > { %1328 = vmatprep.subr.bf16.mxu1 %v1606_v23 }
  0x63   : > { %1323 = vmatpush3.bf16.msra.mxu0 %v1469_v42 }
  0x64   : > { %1305 = vmatmul.mubr.bf16.vlgmr.msra.gmra.mxu1 %v191_v24  ;;  %1348 = vmatprep.subr.bf16.mxu0 %v1606_v23  ;;  %v1482_v24 = vld [vmem:[%s1743_s22 + $0xd8] sm:$0xff]  }
  0x65   : > { %1344 = vmatprep.mubr.msk.bf16.mxu1 %vm1607_vm2, %v1606_v23  ;;  %1329 = vmatpush3.bf16.msra.mxu1 %v1470_v43 }
  0x66   : > { %1330 = vmatprep.subr.bf16.mxu1 %v1606_v23 }
  0x69   : > { %1331 = vmatpush3.bf16.msra.mxu1 %v1471_v44 }
  0x6a   : > { %1332 = vmatprep.subr.bf16.mxu1 %v1606_v23 }
  0x6d   : > { %1333 = vmatpush3.bf16.msra.mxu1 %v1472_v45 }
  0x6e   : > { %1334 = vmatprep.subr.bf16.mxu1 %v1606_v23 }
  0x71   : > { %1335 = vmatpush3.bf16.msra.mxu1 %v1473_v46 }
  0x72   : > { %1336 = vmatprep.subr.bf16.mxu1 %v1606_v23 }
  0x75   : > { %1337 = vmatpush3.bf16.msra.mxu1 %v1474_v47 }
  0x76   : > { %1338 = vmatprep.subr.bf16.mxu1 %v1606_v23 }
  0x79   : > { %1339 = vmatpush3.bf16.msra.mxu1 %v1475_v60 }
  0x7a   : > { %1340 = vmatprep.subr.bf16.mxu1 %v1606_v23 }
  0x7d   : > { %1341 = vmatpush3.bf16.msra.mxu1 %v1476_v62 }
  0x7e   : > { %1342 = vmatprep.subr.bf16.mxu1 %v1606_v23 }
  0x81   : > { %1343 = vmatpush3.bf16.msra.mxu1 %v1477_v63  ;;  %v1188_v63 = vld [vmem:[%s1808_s26 + $0x2] ss:$0 sm:$0xff] }
  0x82   :  { %1374 = vmatprep.subr.bf16.mxu1 (%p96_p10), %v1605_v2 }
  0xbe   : > { %v245_v48 = vpop.permute.xlu0 %244 }
  0xbf   : > { %v536_v28 = vpop.permute.xlu1 %535 }
  0xc2   : > { %v250_v51 = vpop.permute.xlu0 %249 }
  0xc4   : > { %v541_v35 = vpop.permute.xlu1 %540 }
  0xc6   : > { %v555_v45 = vpop.permute.xlu0 %554 }
 0x106   : > { %v235_v49 = vpop.f32.mrf.mxu0 }
 0x107   : > { %v252_v53 = vmul.f32 %v245_v48, %v235_v49 }
 0x108   : > { %v1286_v50 = vpop.f32.mrf.mxu0 }
 0x10a   : > { %v238_v52 = vpop.f32.mrf.mxu0 }
 0x10b   : > { %v253_v54 = vmul.f32 %v250_v51, %v238_v52 }
 0x10c   : > { %v1287_v55 = vpop.f32.mrf.mxu0 }
 0x10d   : > { %v254_v56 = vpack.c.bf16 %v253_v54, %v252_v53 }
 0x10f   : > { %1325 = vmatmul.mubr.bf16.vlgmr.msra.gmra.mxu0 %v254_v56 }
 0x110   : > { %1364 = vmatprep.mubr.msk.bf16.mxu0 %vm1607_vm2, %v1606_v23  ;;  %1349 = vmatpush3.bf16.msra.mxu0 %v1478_v18  ;;  %v1190_v18 = vld [vmem:[%s1808_s26 + $0x4] ss:$0 sm:$0xff] }
 0x111   : > { %1350 = vmatprep.subr.bf16.mxu0 %v1606_v23 }
 0x114   : > { %1351 = vmatpush3.bf16.msra.mxu0 %v1479_v19 }
 0x115   : > { %1352 = vmatprep.subr.bf16.mxu0 %v1606_v23 }
 0x118   : > { %1353 = vmatpush3.bf16.msra.mxu0 %v1480_v20 }
 0x119   : > { %1354 = vmatprep.subr.bf16.mxu0 %v1606_v23 }
 0x11c   : > { %1355 = vmatpush3.bf16.msra.mxu0 %v1481_v21 }
 0x11d   : > { %1356 = vmatprep.subr.bf16.mxu0 %v1606_v23 }
 0x120   : > { %1357 = vmatpush3.bf16.msra.mxu0 %v1482_v24 }
 0x121   : > { %1358 = vmatprep.subr.bf16.mxu0 %v1606_v23 }
 0x124   : > { %v337_v57 = vpop.f32.mrf.mxu1  ;;  %1359 = vmatpush3.bf16.msra.mxu0 %v1483_v25 }
 0x125   : > { %1360 = vmatprep.subr.bf16.mxu0 %v1606_v23 }
 0x126   : > { %v1306_v58 = vpop.f32.mrf.mxu1 }
 0x128   : > { %v340_v59 = vpop.f32.mrf.mxu1  ;;  %1361 = vmatpush3.bf16.msra.mxu0 %v1484_v26 }
 0x129   : > { %1362 = vmatprep.subr.bf16.mxu0 %v1606_v23 }
 0x12a   : > { %v1307_v61 = vpop.f32.mrf.mxu1 }
 0x12c   : > { %1363 = vmatpush3.bf16.msra.mxu0 %v1485_v27 }
 0x12d   :  { %1368 = vmatprep.subr.bf16.mxu0 (%p96_p10), %v1605_v2 }
 0x1cf   : > { %v426_v0 = vpop.f32.mrf.mxu0 }
 0x1d0   : > { %v427_v10 = vadd.f32 %v426_v0, %v337_v57 }
 0x1d1   : > { %v1326_v1 = vpop.f32.mrf.mxu0 }
 0x1d2   : > { %v437_v15 = vadd.f32 %v1178_v11, %v427_v10  ;;  %v1189_v10 = vld [vmem:[%s1808_s26 + $0x3] ss:$0 sm:$0xff] }
 0x1d3   : > { %v429_v12 = vpop.f32.mrf.mxu0 }
 0x1d4   : > { %v430_v13 = vadd.f32 %v429_v12, %v340_v59 }
 0x1d5   : > { %v1327_v14 = vpop.f32.mrf.mxu0 }
 0x1d6   : > { %v438_v16 = vadd.f32 %v1178_v11, %v430_v13 }
 0x1d8   : > { %v439_v17 = vpack.c.bf16 %v438_v16, %v437_v15 }
 0x1da   : > { %1345 = vmatmul.mubr.bf16.vlgmr.msra.gmra.mxu1 %v439_v17 }
 0x1db   :  { %1390 = vmatprep.mubr.msk.bf16.mxu1 (%p96_p10), %vm1609_vm6, %v1605_v2 }
 0x29a   : > { %v526_v30 = vpop.f32.mrf.mxu1 }
 0x29b   : > { %v527_v32 = vadd.f32 %v1179_v29, %v526_v30 }
 0x29c   : > { %v1346_v31 = vpop.f32.mrf.mxu1 }
 0x29d   : > { %v543_v37 = vmul.f32 %v536_v28, %v527_v32 }
 0x29e   : > { %v529_v33 = vpop.f32.mrf.mxu1 }
 0x29f   : > { %v530_v34 = vadd.f32 %v1179_v29, %v529_v33 }
 0x2a0   : > { %v1347_v36 = vpop.f32.mrf.mxu1 }
 0x2a1   : > { %v544_v38 = vmul.f32 %v541_v35, %v530_v34 }
 0x2a3   : > { %v545_v39 = vadd.f32 %v544_v38, %v543_v37 }
 0x2a5   : > { %v546_v40 = vrot.slane %v545_v39, 4 }
 0x2a7   : > { %v547_v41 = vadd.f32 %v546_v40, %v545_v39 }
 0x2a9   : > { %v548_v42 = vrot.slane %v547_v41, 2 }
 0x2ab   : > { %v549_v43 = vadd.f32 %v548_v42, %v547_v41 }
 0x2ad   : > { %v550_v44 = vrot.slane %v549_v43, 1 }
 0x2af   : > { %v551_v23 = vadd.f32 %v550_v44, %v549_v43  ;;  %v1199_v44 = vld [vmem:[%s1808_s26 + $0x5] ss:$0 sm:$0xff] }
 0x2b1   : > { %v557_v46 = vmul.f32 %v555_v45, %v551_v23 }
 0x2b3   : > { %v558_v47 = vsub.f32 %v527_v32, %v557_v46  ;;  %v559_v48 = vsub.f32 %v530_v34, %v557_v46 }
 0x2b5   : > { %v560_v49 = vmul.f32 %v558_v47, %v536_v28  ;;  %v561_v50 = vmul.f32 %v559_v48, %v541_v35 }
 0x2b7   : > { %v562_v51 = vmul.f32 %v560_v49, %v560_v49  ;;  %v563_v52 = vmul.f32 %v561_v50, %v561_v50 }
 0x2b9   : > { %v564_v53 = vadd.f32 %v563_v52, %v562_v51 }
 0x2bb   : > { %v565_v54 = vrot.slane %v564_v53, 4 }
 0x2bd   : > { %v566_v55 = vadd.f32 %v565_v54, %v564_v53 }
 0x2bf   : > { %v567_v56 = vrot.slane %v566_v55, 2 }
 0x2c1   : > { %v568_v57 = vadd.f32 %v567_v56, %v566_v55 }
 0x2c3   : > { %v569_v58 = vrot.slane %v568_v57, 1 }
 0x2c5   : > { %v570_v59 = vadd.f32 %v569_v58, %v568_v57  ;;  %v779_v57 = vld [vmem:[%s1906_s5] sm:$0xff] (%p96_p10)  ;;  %v1610_v58 = vmov (%p96_p10), 1  }
 0x2c6   :  { %1493 = vset.pattern.permute.xlu1 (%p96_p10), %v1610_v58  ;;  %vm781_vm7 = vcmp.gt.f32.partialorder (%p96_p10), %v779_v57, 0.0 }
 0x2c7   : > { %v571_v60 = vmul.f32 %v570_v59, %v555_v45  ;;  %v1200_v45 = vld [vmem:[%s1808_s26 + $0x6] ss:$0 sm:$0xff]  ;;  %v783_v8 = vsel (%p96_p10), %vm781_vm7, 1, %v1611_v7  ;;  %v804_v59 = vsel (%p96_p10), %vm803_vm10, 1, %v1611_v7 }
 0x2c9   : > { %v572_v61 = vadd.f32 1e-05, %v571_v60  ;;  %v1495_v60 = vld [vmem:[#allocation6 + $0x38] sm:$0xff] (%p96_p10)  }
 0x2cb   : > { %1486 = vrsqrt.f32 %v572_v61  ;;  %v772_v61 = vld [vmem:[%s1905_s4] sm:$0x3] (%p96_p10) }
 0x2d8   : > { %v1487_v62 = vpop.eup %1486 }
 0x2d9   : > { %v574_v0 = vmul.f32 %v1487_v62, %v558_v47  ;;  %v575_v1 = vmul.f32 %v1487_v62, %v559_v48  ;;  %v1496_v62 = vld [vmem:[#allocation6 + $0x30] sm:$0xff] (%p96_p10)  }
 0x2db   : > { %v580_v11 = vmul.f32 %v1188_v63, %v574_v0  ;;  %v581_v12 = vmul.f32 %v1188_v63, %v575_v1  ;;  %v1497_v63 = vld [vmem:[#allocation6 + $0x28] sm:$0xff] (%p96_p10)   ;;  %v1498_v0 = vld [vmem:[#allocation6 + $0x20] sm:$0xff] (%p96_p10)   ;;  %v1502_v1 = vld [vmem:[#allocation6 + $0x78] sm:$0xff] (%p96_p10)  }
 0x2dc   :  { %1375 = vmatpush3.bf16.msra.mxu1 (%p96_p10), %v1502_v1 }
 0x2dd   : > { %v587_v13 = vadd.f32 %v1189_v10, %v581_v12  ;;  %v586_v14 = vadd.f32 %v1189_v10, %v580_v11  ;;  %v1499_v10 = vld [vmem:[#allocation6 + $0x18] sm:$0xff] (%p96_p10)   ;;  %v1504_v11 = vld [vmem:[#allocation6 + $0x70] sm:$0xff] (%p96_p10)   ;;  %1376 = vmatprep.subr.bf16.mxu1 (%p96_p10), %v1605_v2 }
 0x2df   : > { %v589_v15 = vmax.f32 %v587_v13, 0.0  ;;  %v588_v16 = vmax.f32 %v586_v14, 0.0  ;;  %v1505_v14 = vld [vmem:[#allocation6 + $0x68] sm:$0xff] (%p96_p10)  }
 0x2e0   :  { %1377 = vmatpush3.bf16.msra.mxu1 (%p96_p10), %v1504_v11 }
 0x2e1   : > { %v590_v17 = vpack.c.bf16 %v589_v15, %v588_v16  ;;  %1378 = vmatprep.subr.bf16.mxu1 (%p96_p10), %v1605_v2  ;;  %v1506_v15 = vld [vmem:[#allocation6 + $0x60] sm:$0xff] (%p96_p10)  }
 0x2e2   :  { %v1503_v16 = vld [vmem:[#allocation6] sm:$0xff] (%p96_p10)  }
 0x2e3   : > { %1365 = vmatmul.mubr.bf16.vlgmr.msra.gmra.mxu0 %v590_v17  ;;  %v1507_v17 = vld [vmem:[#allocation6 + $0x58] sm:$0xff] (%p96_p10)  }
 0x2e4   :  { %1370 = vmatprep.mubr.msk.bf16.mxu0 (%p96_p10), %vm1609_vm6, %v1605_v2  ;;  %1379 = vmatpush3.bf16.msra.mxu1 (%p96_p10), %v1505_v14 }
 0x2e5   :  { %1380 = vmatprep.subr.bf16.mxu1 (%p96_p10), %v1605_v2 }
 0x2e8   :  { %1381 = vmatpush3.bf16.msra.mxu1 (%p96_p10), %v1506_v15 }
 0x2e9   :  { %1382 = vmatprep.subr.bf16.mxu1 (%p96_p10), %v1605_v2 }
 0x2ec   :  { %1383 = vmatpush3.bf16.msra.mxu1 (%p96_p10), %v1507_v17 }
 0x2ed   :  { %1384 = vmatprep.subr.bf16.mxu1 (%p96_p10), %v1605_v2 }
 0x3a3   : > { %v677_v19 = vpop.f32.mrf.mxu0 }
 0x3a4   : > { %v678_v20 = vadd.f32 %v1190_v18, %v677_v19  ;;  %v1509_v19 = vld [vmem:[#allocation6 + $0x48] sm:$0xff] (%p96_p10)  }
 0x3a5   : > { %v1366_v21 = vpop.f32.mrf.mxu0 }
 0x3a6   : > { %684 = vadd.xlane.f32.xlu1 %v678_v20 }
 0x3a7   : > { %v680_v24 = vpop.f32.mrf.mxu0 }
 0x3a8   : > { %v681_v25 = vadd.f32 %v1190_v18, %v680_v24  ;;  %v1508_v18 = vld [vmem:[#allocation6 + $0x50] sm:$0xff] (%p96_p10)  }
 0x3a9   : > { %v1367_v26 = vpop.f32.mrf.mxu0  ;;  %1385 = vmatpush3.bf16.msra.mxu1 (%p96_p10), %v1508_v18 }
 0x3aa   : > { %686 = vadd.xlane.f32.xlu0 %v681_v25  ;;  %1386 = vmatprep.subr.bf16.mxu1 (%p96_p10), %v1605_v2 }
 0x3ad   :  { %1387 = vmatpush3.bf16.msra.mxu1 (%p96_p10), %v1509_v19 }
 0x3ae   :  { %1388 = vmatprep.subr.bf16.mxu1 (%p96_p10), %v1605_v2 }
 0x42f   : > { %v685_v27 = vpop.xlane.xlu1 %684 }
 0x430   : > { %v688_v28 = vmul.f32 0.03125, %v685_v27 }
 0x432   : > { %v690_v29 = vsub.f32 %v678_v20, %v688_v28  ;;  %v1510_v20 = vld [vmem:[#allocation6 + $0x40] sm:$0xff] (%p96_p10)  }
 0x433   : > { %v687_v30 = vpop.xlane.xlu0 %686  ;;  %1389 = vmatpush3.bf16.msra.mxu1 (%p96_p10), %v1510_v20 }
 0x434   : > { %v689_v31 = vmul.f32 0.03125, %v687_v30  ;;  %v692_v32 = vmul.f32 %v1680_v3, %v690_v29 }
 0x436   : > { %v691_v33 = vsub.f32 %v681_v25, %v689_v31  ;;  %v694_v34 = vmul.f32 %v692_v32, %v692_v32 }
 0x438   : > { %696 = vadd.xlane.f32.xlu0 %v694_v34  ;;  %v693_v35 = vmul.f32 %v1680_v3, %v691_v33  ;;  %v780_v3 = vld [vmem:[%s1906_s5 + $0x8] sm:$0xff] (%p96_p10) }
 0x439   :  { %vm782_vm8 = vcmp.gt.f32.partialorder (%p96_p10), %v780_v3, 0.0 }
 0x43a   : > { %v695_v36 = vmul.f32 %v693_v35, %v693_v35  ;;  %v784_v9 = vsel (%p96_p10), %vm782_vm8, 1, %v1611_v7 }
 0x43c   : > { %698 = vadd.xlane.f32.xlu1 %v695_v36 }
 0x44d   :  { %812 = vperm.xlu1 (%p96_p10), %1493, %v783_v8  }
 0x44e   :  { %786 = vperm.xlu0 (%p96_p10), %1492, %v783_v8  }
 0x451   :  { %815 = vperm.xlu1 (%p96_p10), %1493, %v784_v9  }
 0x452   :  { %789 = vperm.xlu0 (%p96_p10), %1492, %v784_v9  }
 0x455   :  { %1494 = vset.pattern.permute.xlu1 (%p96_p10), %v1611_v7 }
 0x456   :  { %806 = vperm.xlu0 (%p96_p10), %1492, %v804_v59   ;;  %832 = vperm.xlu1 (%p96_p10), %1494, %v830_v22  }
 0x45a   :  { %775 = vperm.xlu0 (%p96_p10), %1492, %v772_v61  }
 0x4c1   : > { %v697_v37 = vpop.xlane.xlu0 %696 }
 0x4c2   : > { %v700_v38 = vmul.f32 0.03125, %v697_v37 }
 0x4c4   : > { %v702_v39 = vadd.f32 1e-05, %v700_v38 }
 0x4c5   : > { %v699_v40 = vpop.xlane.xlu1 %698 }
 0x4c6   : > { %1488 = vrsqrt.f32 %v702_v39  ;;  %v701_v41 = vmul.f32 0.03125, %v699_v40 }
 0x4c8   : > { %v703_v42 = vadd.f32 1e-05, %v701_v41 }
 0x4c9   :  { %v813_v21 = vpop.permute.xlu1 (%p96_p10), %812  ;;  %v787_v24 = vpop.permute.xlu0 (%p96_p10), %786 }
 0x4ca   : > { %1490 = vrsqrt.f32 %v703_v42  ;;  %vm817_vm11 = vcmp.eq.s32.totalorder (%p96_p10), %v813_v21, 1  ;;  %vm791_vm12 = vcmp.eq.s32.totalorder (%p96_p10), %v787_v24, 1 }
 0x4cd   :  { %v816_v27 = vpop.permute.xlu1 (%p96_p10), %815  ;;  %v790_v28 = vpop.permute.xlu0 (%p96_p10), %789 }
 0x4ce   :  { %vm818_vm13 = vcmp.eq.s32.totalorder (%p96_p10), %v816_v27, 1  ;;  %vm792_vm14 = vcmp.eq.s32.totalorder (%p96_p10), %v790_v28, 1 }
 0x4d1   :  { %v833_v39 = vpop.permute.xlu1 (%p96_p10), %832  ;;  %v807_v41 = vpop.permute.xlu0 (%p96_p10), %806 }
 0x4d2   :  { %vm834_vm15 = vcmp.eq.s32.totalorder (%p96_p10), %v833_v39, 1  ;;  %vm808_vm0 = vcmp.eq.s32.totalorder (%p96_p10), %v807_v41, 1 }
 0x4d3   : > { %v1489_v43 = vpop.eup %1488 }
 0x4d4   : > { %v706_v23 = vmul.f32 %v1489_v43, %v690_v29 }
 0x4d6   : > { %v712_v46 = vmul.f32 %v1199_v44, %v706_v23 }
 0x4d7   : > { %v1491_v47 = vpop.eup %1490 }
 0x4d8   : > { %v718_v48 = vadd.f32 %v1200_v45, %v712_v46  ;;  %v707_v49 = vmul.f32 %v1491_v47, %v691_v33 }
 0x4da   : > { %vm720_vm4 = vcmp.ge.f32.partialorder %v718_v48, 0.0  ;;  %v722_v50 = vmul.f32 0.1, %v718_v48  ;;  %v713_v51 = vmul.f32 %v1199_v44, %v707_v49  ;;  %v776_v49 = vpop.permute.xlu0 (%p96_p10), %775 }
 0x4dc   : > { %v1834_v12 = vsel %vm720_vm4, %v718_v48, %v722_v50   ;;  %v719_v53 = vadd.f32 %v1200_v45, %v713_v51 }
 0x4dd   : > { %v1913_v52 = vmov %v1834_v12 }
 0x4de   : > { %vm721_vm5 = vcmp.ge.f32.partialorder %v719_v53, 0.0  ;;  %v723_v54 = vmul.f32 0.1, %v719_v53  ;;  %v1916_v12 = vmov %v1913_v52  ;;  %98 = sbr.rel (!%p96_p10) target bundleno = 63 (0x3f), region = 85  ;;  %v819_v25 = vsel (%p96_p10), %vm817_vm11, %v1913_v52, -1e+30 }
 0x4df   :  { %v1500_v12 = vld [vmem:[#allocation6 + $0x10] sm:$0xff] (%p96_p10)   ;;  %v793_v26 = vsel (%p96_p10), %vm791_vm12, %v1913_v52, -1e+30 }
 0x4e0   : > { %v1836_v13 = vsel %vm721_vm5, %v719_v53, %v723_v54  }
 0x4e1   : > { %v1914_v55 = vmov %v1836_v13 }
 0x4e2   : > { %v1915_v13 = vmov %v1914_v55  ;;  %v726_v56 = vpack.c.bf16 (%p96_p10), %v1914_v55, %v1913_v52  ;;  %v820_v29 = vsel (%p96_p10), %vm818_vm13, %v1914_v55, -1e+30  ;;  %v794_v30 = vsel (%p96_p10), %vm792_vm14, %v1914_v55, -1e+30 }
 0x4e3   :  { %v1501_v13 = vld [vmem:[#allocation6 + $0x8] sm:$0xff]   ;;  %v821_v31 = vmax.f32 %v819_v25, %v820_v29 }
 0x4e4   :  { %1369 = vmatpush3.bf16.msra.mxu0 %v726_v56 }
 0x4e5   :  { %1394 = vmatprep.subr.bf16.mxu0 %v1605_v2  ;;  %v822_v32 = vrot.slane %v821_v31, 4 }
 0x4e7   :  { %1371 = vmatmul.mubr.msk.bf16.vlgmr.msra.gmra.mxu0 %vm197_vm3, %v727_v6  ;;  %v823_v34 = vmax.f32 %v821_v31, %v822_v32 }
 0x4e8   :  { %1395 = vmatpush3.bf16.msra.mxu0 %v1495_v60  ;;  %1410 = vmatprep.mubr.msk.bf16.mxu0 %vm1609_vm6, %v1605_v2 }
 0x4e9   :  { %1396 = vmatprep.subr.bf16.mxu0 %v1605_v2  ;;  %v824_v36 = vrot.slane %v823_v34, 2 }
 0x4eb   :  { %v825_v38 = vmax.f32 %v823_v34, %v824_v36 }
 0x4ec   :  { %1397 = vmatpush3.bf16.msra.mxu0 %v1496_v62 }
 0x4ed   :  { %1398 = vmatprep.subr.bf16.mxu0 %v1605_v2  ;;  %v826_v42 = vrot.slane %v825_v38, 1 }
 0x4ef   :  { %v827_v44 = vmax.f32 %v825_v38, %v826_v42 }
 0x4f0   :  { %1399 = vmatpush3.bf16.msra.mxu0 %v1497_v63 }
 0x4f1   :  { %1400 = vmatprep.subr.bf16.mxu0 %v1605_v2  ;;  %v835_v45 = vsel %vm834_vm15, %v827_v44, 0.0 }
 0x4f2   :  { %836 = vst [vmem:[#allocation2 + $0x1] sm:$0x1] %v835_v45 }
 0x4f4   :  { %1401 = vmatpush3.bf16.msra.mxu0 %v1498_v0 }
 0x4f5   :  { %1402 = vmatprep.subr.bf16.mxu0 %v1605_v2 }
 0x4f8   :  { %1403 = vmatpush3.bf16.msra.mxu0 %v1499_v10 }
 0x4f9   :  { %1404 = vmatprep.subr.bf16.mxu0 %v1605_v2 }
 0x4fc   :  { %1405 = vmatpush3.bf16.msra.mxu0 %v1500_v12 }
 0x4fd   :  { %1406 = vmatprep.subr.bf16.mxu0 %v1605_v2 }
 0x500   :  { %1407 = vmatpush3.bf16.msra.mxu0 %v1501_v13 }
 0x501   :  { %1408 = vmatprep.subr.bf16.mxu0 %v1605_v2  ;;  %v795_v2 = vmax.f32 %v793_v26, %v794_v30 }
 0x503   :  { %v796_v33 = vrot.slane %v795_v2, 4 }
 0x504   :  { %1409 = vmatpush3.bf16.msra.mxu0 %v1503_v16 }
 0x505   :  { %v797_v35 = vmax.f32 %v795_v2, %v796_v33 }
 0x507   :  { %v798_v37 = vrot.slane %v797_v35, 2 }
 0x509   :  { %v799_v40 = vmax.f32 %v797_v35, %v798_v37 }
 0x50b   :  { %v800_v43 = vrot.slane %v799_v40, 1 }
 0x50d   :  { %v801_v23 = vmax.f32 %v799_v40, %v800_v43 }
 0x50f   :  { %v809_v46 = vsel %vm808_vm0, %v801_v23, 0.0 }
 0x510   :  { %810 = vst [vmem:[#allocation2] sm:$0x1] %v809_v46 }
 0x517   :  { %v837_v47 = vld [vmem:[#allocation2] sm:$0x3] }
 0x518   :  { %v838_v48 = vpack.c.bf16 %v837_v47, %v837_v47 }
 0x51a   :  { %1411 = vmatmul.mubr.bf16.vlgmr.msra.gmra.mxu0 %v838_v48 }
 0x5a7   :  { %v766_v50 = vpop.f32.mrf.mxu0 }
 0x5a8   :  { %v778_v51 = vmul.f32 %v776_v49, %v766_v50 }
 0x5a9   :  { %v1372_v52 = vpop.f32.mrf.mxu0 }
 0x5aa   :  { %v855_v53 = vpack.c.bf16 %v778_v51, %v778_v51 }
 0x5ab   :  { %v769_v54 = vpop.f32.mrf.mxu0 }
 0x5ac   :  { %1391 = vmatmul.mubr.bf16.vlgmr.msra.gmra.mxu1 %v855_v53 }
 0x5ad   :  { %v1373_v55 = vpop.f32.mrf.mxu0 }
 0x5da   :  { %v1043_v56 = vpop.f32.mrf.mxu0 }
 0x5dc   :  { %v1412_v57 = vpop.f32.mrf.mxu0 }
 0x5de   :  { %v1046_v58 = vpop.f32.mrf.mxu0 }
 0x5e0   :  { %v1413_v3 = vpop.f32.mrf.mxu0 }
 0x66c   :  { %v955_v4 = vpop.f32.mrf.mxu1 }
 0x66d   :  { %v1044_v6 = vadd.f32 %v1043_v56, %v955_v4 }
 0x66e   :  { %v1392_v7 = vpop.f32.mrf.mxu1 }
 0x66f   :  { %v1056_v8 = vadd.f32 %v1218_v5, %v1044_v6 }
 0x670   :  { %v958_v9 = vpop.f32.mrf.mxu1 }
 0x671   :  { %1057 = vst [vmem:[#allocation8] sm:$0x3] %v1056_v8 }
 0x672   :  { %v1393_v22 = vpop.f32.mrf.mxu1 }
 0x673   :  { %1562 = shalt.err (!%p1559_p1)
}
 0x674   :  { %1067 = dma.vmem_to_hbm [thread:$0]  %s1065_s17, 32, %s1912_s11, [#allocation5]  }
 0x675   :  { %1587 = dma.done.wait [#allocation5], 32  }
 0x676   :  { %1588 = vsyncadd [#allocation5], 4294967264 }
 0x677   :  { %1071 = vsyncpa [#allocation4], 1 }
 0x678   :  { %1072 = vsyncpa [#allocation7], 1 }
 0x679   :  { %1073 = vsyncpa [#allocation5], 1 }

</bundles_post_ra>
